<compile_context>
chip_gen: v6e
topology: v6e:2x2x1
jax: 0.10.0
libtpu: 0.0.40
codegen_flags: <defaults>
</compile_context>

<pallas_src>
import functools

import numpy as np
import jax
import jax.numpy as jnp
from jax.experimental import pallas as pl
from jax.experimental.pallas import tpu as pltpu


# --------------------------------------------------------------------------- #
# Kernel
# --------------------------------------------------------------------------- #
def _dmd_loss_kernel(ratio_ref, a_ref, dmd_ref, pred_ref, targ_ref, out_ref,
                     *, inv_n):
    """Single-invocation kernel: chained MXU matmuls + two small reductions.

    ratio_ref : (2,)        f32 SMEM  -- [mse_ratio, dmd_ratio] (runtime scalars)
    a_ref     : (L, SQ, SQ) f32 VMEM  -- compact identity-padded A matrices
    dmd_ref   : (SQ, SQ)    f32 VMEM  -- identity-padded dmd_data
    pred/targ : lane-dense 2-D slabs of predicted / target
    out_ref   : (1, 1)      f32 VMEM
    """
    L = a_ref.shape[0]

    # F0 = A_{L-1} @ ... @ A_0.  L is tiny & static -> unrolled Python loop.
    # (For deep models use lax.fori_loop / a grid axis over L instead.)
    f = a_ref[0]
    for l in range(1, L):
        f = jnp.dot(a_ref[l], f, preferred_element_type=jnp.float32)

    # ||F0 - dmd||_F over the compact slab only; identity padding cancels, so
    # this equals the unpadded (D+1, D+1) Frobenius norm exactly.
    diff = f - dmd_ref[...]
    dmd_loss = jnp.sqrt(jnp.sum(diff * diff, keepdims=True))           # (1, 1)

    # MSE over the lane-dense prediction / target slabs.
    pd = pred_ref[...] - targ_ref[...]
    mse = jnp.sum(pd * pd, keepdims=True) * inv_n                      # (1, 1)

    out_ref[...] = ratio_ref[0] * mse + ratio_ref[1] * dmd_loss


# --------------------------------------------------------------------------- #
# Wrapper / glue
# --------------------------------------------------------------------------- #
def _round_up(n, m):
    return ((n + m - 1) // m) * m


def _build_a_stack(w_stack, b_stack, sq):
    """(L, D, D) weights + (L, D) biases -> (L, sq, sq) identity-padded A's.

    Row layout per layer:   rows 0..D-1 : [ W | b | 0 ]
                            row  D      : [ 0 ... 0 1 0 ... ]   (affine row)
                            rows D+1..  : identity padding
    """
    L, D, _ = w_stack.shape
    top = jnp.concatenate(
        [w_stack, b_stack[:, :, None],
         jnp.zeros((L, D, sq - D - 1), w_stack.dtype)], axis=2)        # (L, D, sq)
    # Constant bottom rows (affine "1" row + identity padding), built on host.
    bottom = np.zeros((sq - D, sq), np.float32)
    bottom[np.arange(sq - D), np.arange(D, sq)] = 1.0
    bottom = jnp.broadcast_to(jnp.asarray(bottom), (L, sq - D, sq))
    return jnp.concatenate([top, bottom], axis=1)                      # (L, sq, sq)


def _pad_dmd(dmd_data, sq):
    """Pad (D+1, D+1) dmd_data into the top-left of an sq x sq identity."""
    n = dmd_data.shape[0]
    eye = jnp.asarray(np.eye(sq, dtype=np.float32))
    return eye.at[:n, :n].set(dmd_data.astype(jnp.float32))


@jax.jit
def dmd_loss(w_stack, b_stack, dmd_pad, predicted, target, loss_ratio):
    """DMDLoss.forward: loss_ratio[0]*MSE(pred,target) + loss_ratio[1]*||F0-dmd||_F."""
    sq = dmd_pad.shape[0]
    a_stack = _build_a_stack(w_stack, b_stack, sq)                     # (L, sq, sq)

    # Lane-dense MSE operands when possible: (B, D) -> (B*D/128, 128).
    n_elems = predicted.size
    if n_elems % 128 == 0:
        pred2 = predicted.reshape(-1, 128)
        targ2 = target.reshape(-1, 128)
    else:
        pred2, targ2 = predicted, target

    kernel = functools.partial(_dmd_loss_kernel, inv_n=1.0 / n_elems)
    out = pl.pallas_call(
        kernel,
        out_shape=jax.ShapeDtypeStruct((1, 1), jnp.float32),
        in_specs=[
            pl.BlockSpec(memory_space=pltpu.MemorySpace.SMEM),   # loss_ratio (2,)
            pl.BlockSpec(memory_space=pltpu.MemorySpace.VMEM),   # a_stack (L,sq,sq)
            pl.BlockSpec(memory_space=pltpu.MemorySpace.VMEM),   # dmd_pad (sq,sq)
            pl.BlockSpec(memory_space=pltpu.MemorySpace.VMEM),   # predicted
            pl.BlockSpec(memory_space=pltpu.MemorySpace.VMEM),   # target
        ],
        out_specs=pl.BlockSpec(memory_space=pltpu.MemorySpace.VMEM),
    )(loss_ratio, a_stack, dmd_pad, pred2, targ2)
    return out[0, 0]


# --------------------------------------------------------------------------- #
# Demo / correctness check
# --------------------------------------------------------------------------- #
if __name__ == "__main__":
    D = 32                      # width of each Linear(D, D) layer
    L = 3                       # number of Linear layers in the MLP
    B = 8                       # batch size for predicted / target
    SQ = _round_up(D + 1, 8)    # 40: sublane-aligned compact slab size

    key = jax.random.PRNGKey(0)
    keys = jax.random.split(key, 5)
    w_stack = 0.2 * jax.random.normal(keys[0], (L, D, D), jnp.float32)
    b_stack = 0.1 * jax.random.normal(keys[1], (L, D), jnp.float32)
    dmd_data = jax.random.normal(keys[2], (D + 1, D + 1), jnp.float32)
    predicted = jax.random.normal(keys[3], (B, D), jnp.float32)
    target = jax.random.normal(keys[4], (B, D), jnp.float32)
    loss_ratio = jnp.array([1.0, 1.0], jnp.float32)

    # dmd_data is a fixed dataset matrix -> pad it once and cache on device.
    dmd_pad = _pad_dmd(dmd_data, SQ)                                   # (SQ, SQ)

    out = dmd_loss(w_stack, b_stack, dmd_pad, predicted, target, loss_ratio)
    out = jax.block_until_ready(out)

    # Pure-JAX reference (mirrors the PyTorch math exactly).
    def make_A(W, b):
        wb = jnp.concatenate([W, b[:, None]], axis=1)
        zeroone = jnp.concatenate(
            [jnp.zeros((D,), jnp.float32), jnp.ones((1,), jnp.float32)])[None, :]
        return jnp.concatenate([wb, zeroone], axis=0)

    As = [make_A(w_stack[i], b_stack[i]) for i in range(L)]
    F0 = As[-1]
    for A in As[-2::-1]:
        F0 = F0 @ A
    ref = (loss_ratio[0] * jnp.mean((predicted - target) ** 2)
           + loss_ratio[1] * jnp.sqrt(jnp.sum((F0 - dmd_data) ** 2)))
    assert np.allclose(np.asarray(out), np.asarray(ref), rtol=1e-4, atol=1e-4), (
        float(out), float(ref))

    print("KERNEL_OK")
</pallas_src>

<mosaic_0001>
module attributes {stable_mosaic.version = 11 : i64} {
  func.func @_dmd_loss_kernel(%arg0: memref<2xf32, #tpu.memory_space<smem>>, %arg1: memref<3x40x40xf32, #tpu.memory_space<vmem>>, %arg2: memref<40x40xf32, #tpu.memory_space<vmem>>, %arg3: memref<2x128xf32, #tpu.memory_space<vmem>>, %arg4: memref<2x128xf32, #tpu.memory_space<vmem>>, %arg5: memref<1x1xf32, #tpu.memory_space<vmem>>) attributes {dimension_semantics = [], scalar_prefetch = 0 : i64, scratch_operands = 0 : i64, tpu.core_type = #tpu.core_type<tc>} {
    %c0 = arith.constant 0 : index
    %c0_0 = arith.constant 0 : index
    %c0_1 = arith.constant 0 : index
    %0 = vector.load %arg1[%c0, %c0_0, %c0_1] : memref<3x40x40xf32, #tpu.memory_space<vmem>>, vector<1x40x40xf32>
    %1 = vector.shape_cast %0 : vector<1x40x40xf32> to vector<40x40xf32>
    %c1 = arith.constant 1 : index
    %c0_2 = arith.constant 0 : index
    %c0_3 = arith.constant 0 : index
    %2 = vector.load %arg1[%c1, %c0_2, %c0_3] : memref<3x40x40xf32, #tpu.memory_space<vmem>>, vector<1x40x40xf32>
    %3 = vector.shape_cast %2 : vector<1x40x40xf32> to vector<40x40xf32>
    %cst = arith.constant dense<0.000000e+00> : vector<40x40xf32>
    %4 = tpu.matmul %3, %1, %cst {dimension_numbers = #tpu.dot_dimension_numbers<[1], [0], [0], [1], [0, 0, 1, 1], [], []>} : vector<40x40xf32>, vector<40x40xf32>, vector<40x40xf32> -> vector<40x40xf32>
    %c2 = arith.constant 2 : index
    %c0_4 = arith.constant 0 : index
    %c0_5 = arith.constant 0 : index
    %5 = vector.load %arg1[%c2, %c0_4, %c0_5] : memref<3x40x40xf32, #tpu.memory_space<vmem>>, vector<1x40x40xf32>
    %6 = vector.shape_cast %5 : vector<1x40x40xf32> to vector<40x40xf32>
    %cst_6 = arith.constant dense<0.000000e+00> : vector<40x40xf32>
    %7 = tpu.matmul %6, %4, %cst_6 {dimension_numbers = #tpu.dot_dimension_numbers<[1], [0], [0], [1], [0, 0, 1, 1], [], []>} : vector<40x40xf32>, vector<40x40xf32>, vector<40x40xf32> -> vector<40x40xf32>
    %c0_7 = arith.constant 0 : index
    %c0_8 = arith.constant 0 : index
    %8 = vector.load %arg2[%c0_7, %c0_8] : memref<40x40xf32, #tpu.memory_space<vmem>>, vector<40x40xf32>
    %9 = arith.subf %7, %8 : vector<40x40xf32>
    %10 = arith.mulf %9, %9 : vector<40x40xf32>
    %11 = vector.shape_cast %10 : vector<40x40xf32> to vector<1x40x40xf32>
    %cst_9 = arith.constant dense<0.000000e+00> : vector<1xf32>
    %12 = vector.multi_reduction <add>, %11, %cst_9 [1, 2] : vector<1x40x40xf32> to vector<1xf32>
    %13 = vector.shape_cast %12 : vector<1xf32> to vector<1x1x1xf32>
    %14 = vector.extract %13[0, 0, 0] : f32 from vector<1x1x1xf32>
    %15 = vector.broadcast %14 : f32 to vector<1x1xf32>
    %16 = math.sqrt %15 : vector<1x1xf32>
    %c0_10 = arith.constant 0 : index
    %c0_11 = arith.constant 0 : index
    %17 = vector.load %arg3[%c0_10, %c0_11] : memref<2x128xf32, #tpu.memory_space<vmem>>, vector<2x128xf32>
    %c0_12 = arith.constant 0 : index
    %c0_13 = arith.constant 0 : index
    %18 = vector.load %arg4[%c0_12, %c0_13] : memref<2x128xf32, #tpu.memory_space<vmem>>, vector<2x128xf32>
    %19 = arith.subf %17, %18 : vector<2x128xf32>
    %20 = arith.mulf %19, %19 : vector<2x128xf32>
    %21 = vector.shape_cast %20 : vector<2x128xf32> to vector<1x2x128xf32>
    %cst_14 = arith.constant dense<0.000000e+00> : vector<1xf32>
    %22 = vector.multi_reduction <add>, %21, %cst_14 [1, 2] : vector<1x2x128xf32> to vector<1xf32>
    %23 = vector.shape_cast %22 : vector<1xf32> to vector<1x1x1xf32>
    %24 = vector.extract %23[0, 0, 0] : f32 from vector<1x1x1xf32>
    %25 = vector.broadcast %24 : f32 to vector<1x1xf32>
    %cst_15 = arith.constant 3.906250e-03 : f32
    %26 = vector.broadcast %cst_15 : f32 to vector<1x1xf32>
    %27 = arith.mulf %25, %26 : vector<1x1xf32>
    %c0_16 = arith.constant 0 : index
    %28 = memref.load %arg0[%c0_16] : memref<2xf32, #tpu.memory_space<smem>>
    %29 = vector.broadcast %28 : f32 to vector<1x1xf32>
    %30 = arith.mulf %29, %27 : vector<1x1xf32>
    %c1_17 = arith.constant 1 : index
    %31 = memref.load %arg0[%c1_17] : memref<2xf32, #tpu.memory_space<smem>>
    %32 = vector.broadcast %31 : f32 to vector<1x1xf32>
    %33 = arith.mulf %32, %16 : vector<1x1xf32>
    %34 = arith.addf %30, %33 : vector<1x1xf32>
    %c0_18 = arith.constant 0 : index
    %c0_19 = arith.constant 0 : index
    %35 = vector.load %arg5[%c0_18, %c0_19] : memref<1x1xf32, #tpu.memory_space<vmem>>, vector<1x1xf32>
    tpu.vector_store %arg5[%c0_18, %c0_19], %34 {strides = array<i32>} : memref<1x1xf32, #tpu.memory_space<vmem>>, vector<1x1xf32>,
    return
  }
}

</mosaic_0001>

<bundles_post_ra>
// kernel: dmd_loss.1
= control target key start
LH: loop header
LB: loop body
LE: loop exit
PB: predicated region body
PF: predicated region fallthrough
CT: control target
= control target key end

     0   :  { %10 = vsyncpa [#allocation4], 0  ;;  %s632_s0 = inlined_call_operand.vmem [shape: f32[2], index: 0, kind: input, shape index: {}]   ;;  %s633_s1 = inlined_call_operand.vmem [shape: f32[3,40,40], index: 1, kind: input, shape index: {}]   ;;  %s634_s2 = inlined_call_operand.vmem [shape: f32[40,40], index: 2, kind: input, shape index: {}]   ;;  %s635_s3 = inlined_call_operand.vmem [shape: f32[2,128], index: 3, kind: input, shape index: {}]   ;;  %s636_s4 = inlined_call_operand.vmem [shape: f32[2,128], index: 4, kind: input, shape index: {}]   ;;  %s637_s5 = inlined_call_operand.hbm [shape: f32[1,1], index: 5, kind: output, shape index: {}]  }
   0x1   :  { %11 = vsyncpa [#allocation3], 0  ;;  %s18_s20 = sshll.u32 %s632_s0, 4  ;;  %s19_s20 = int_to_ptr.vmem [resolvable:$true] %s18_s20 }
   0x2   :  { %s445_s21 = scalar_lea.vmem %s19_s20, 16  ;;  %p450_p1 = scmp.lt.s32.totalorder %s19_s20, %s19_s20 }
   0x3   :  { %p446_p0 = scmp.ne.s32.totalorder %s19_s20, %s445_s21  ;;  %p451_p2 = scmp.lt.s32.totalorder %s445_s21, %s445_s21 }
   0x5   :  { %p452_p3 = por %p451_p2, %p450_p1 }
   0x7   :  { %p453_p4 = pnand %p452_p3, %p446_p0 }
   0x9   :  { %456 = shalt.err (!%p453_p4)
}
   0xa   :  { %s481_s22 = smov [#allocation2]  }
   0xb   :  { %21 = dma.vmem_to_smem %s19_s20, 16, %s481_s22, [#allocation4]  }
   0xc   :  { %477 = dma.done.wait [#allocation4], 16  }
   0xd   :  { %478 = vsyncadd [#allocation4], 4294967280 }
   0xe   :  { %33 = sfence }
   0xf   :  { %v38_v0 = vld [vmem:[%s633_s1 + $0x20] sm:$0xff]  ;;  %v482_v1 = vmov 0.0   ;;  %v37_v2 = vld [vmem:[%s633_s1 + $0x18] sm:$0xff]  ;;  %vm483_vm0 = vmmov 0   ;;  %v36_v3 = vld [vmem:[%s633_s1 + $0x10] sm:$0xff]  ;;  %vm45_vm1 = vcmask 326656  }
  0x10   :  { %385 = vmatprep.subr.mxu0 %v482_v1  ;;  %395 = vmatprep.mubr.msk.f32.mxu0 %vm483_vm0, %v482_v1  ;;  %v35_v4 = vld [vmem:[%s633_s1 + $0x8] sm:$0xff]  ;;  %v34_v5 = vld [vmem:[%s633_s1] sm:$0xff]  ;;  %v345_v7 = vld [vmem:[%s633_s1 + $0x30] sm:$0xff]  ;;  %vm307_vm2 = vcmask 1041408   ;;  %s484_s15 = smov [#allocation5]   ;;  %vm327_vm5 = vcmask 0  }
  0x11   :  { %386 = vmatpush3.msra.mxu0 %v38_v0  ;;  %410 = vmatprep.subr.mxu1 %v482_v1  ;;  %v344_v6 = vld [vmem:[%s633_s1 + $0x28] sm:$0xff]  ;;  %v346_v8 = vld [vmem:[%s633_s1 + $0x38] sm:$0xff]  ;;  %v347_v9 = vld [vmem:[%s633_s1 + $0x40] sm:$0xff]  ;;  %s335_s16 = sshll.u32 %s484_s15, 4  ;;  %s336_s16 = int_to_ptr.vmem [resolvable:$true] %s335_s16 }
  0x12   :  { %387 = vmatprep.subr.mxu0 %v482_v1  ;;  %420 = vmatprep.mubr.msk.f32.mxu1 %vm483_vm0, %v482_v1  ;;  %v348_v10 = vld [vmem:[%s633_s1 + $0x48] sm:$0xff]  ;;  %v354_v21 = vld [vmem:[%s633_s1 + $0x50] sm:$0xff]  ;;  %v355_v22 = vld [vmem:[%s633_s1 + $0x58] sm:$0xff]  ;;  %s457_s17 = scalar_lea.vmem %s336_s16, 16  ;;  %s461_s18 = scalar_lea.vmem %s336_s16, 32 }
  0x13   :  { %388 = vmatpush3.msra.mxu0 %v37_v2  ;;  %v356_v23 = vld [vmem:[%s633_s1 + $0x60] sm:$0xff]  ;;  %v357_v24 = vld [vmem:[%s633_s1 + $0x68] sm:$0xff]  ;;  %v358_v25 = vld [vmem:[%s633_s1 + $0x70] sm:$0xff]  ;;  %p458_p5 = scmp.ne.s32.totalorder %s336_s16, %s457_s17  ;;  %p462_p6 = scmp.lt.s32.totalorder %s336_s16, %s336_s16 }
  0x14   :  { %389 = vmatprep.subr.mxu0 %v482_v1  ;;  %v263_v28 = vld [vmem:[%s634_s2 + $0x8] sm:$0xff]  ;;  %v262_v29 = vld [vmem:[%s634_s2] sm:$0xff]  ;;  %v264_v33 = vld [vmem:[%s634_s2 + $0x10] sm:$0xff]  ;;  %p463_p7 = scmp.lt.s32.totalorder %s461_s18, %s457_s17 }
  0x15   :  { %390 = vmatpush3.msra.mxu0 %v36_v3  ;;  %v265_v39 = vld [vmem:[%s634_s2 + $0x18] sm:$0xff]  ;;  %v266_v46 = vld [vmem:[%s634_s2 + $0x20] sm:$0xff] }
  0x16   :  { %391 = vmatprep.subr.mxu0 %v482_v1  ;;  %v303_v47 = vld [vmem:[%s635_s3] sm:$0x3]  ;;  %s320_s3 = sld [smem:[#allocation2]]  ;;  %p464_p8 = por %p463_p7, %p462_p6 }
  0x17   :  { %392 = vmatpush3.msra.mxu0 %v35_v4  ;;  %v304_v48 = vld [vmem:[%s636_s4] sm:$0x3]  ;;  %s364_s4 = sld [smem:[#allocation2 + $0x1]] }
  0x18   :  { %393 = vmatprep.subr.mxu0 %v482_v1  ;;  %v305_v56 = vsub.f32 %v303_v47, %v304_v48  ;;  %p465_p9 = pnand %p464_p8, %p458_p5 }
  0x19   :  { %394 = vmatpush3.msra.mxu0 %v34_v5 }
  0x1a   :  { %396 = vmatmul.mubr.msk.f32.vlgmr.msra.gmra.mxu0 %vm45_vm1, %v344_v6  ;;  %v306_v62 = vmul.f32 %v305_v56, %v305_v56 }
  0x1b   :  { %398 = vmatprep.mubr.msk.f32.mxu0 %vm483_vm0, %v482_v1 }
  0x1c   :  { %v308_v0 = vsel %vm307_vm2, %v306_v62, 0.0 }
  0x1e   :  { %399 = vmatmul.mubr.msk.f32.gmra.mxu0 %vm45_vm1, %v345_v7 }
  0x1f   :  { %401 = vmatprep.mubr.msk.f32.mxu0 %vm483_vm0, %v482_v1 }
  0x22   :  { %402 = vmatmul.mubr.msk.f32.gmra.mxu0 %vm45_vm1, %v346_v8 }
  0x23   :  { %404 = vmatprep.mubr.msk.f32.mxu0 %vm483_vm0, %v482_v1 }
  0x26   :  { %405 = vmatmul.mubr.msk.f32.gmra.mxu0 %vm45_vm1, %v347_v9 }
  0x27   :  { %407 = vmatprep.mubr.msk.f32.mxu0 %vm483_vm0, %v482_v1 }
  0x2a   :  { %408 = vmatmul.mubr.msk.f32.gmra.mxu0 %vm45_vm1, %v348_v10 }
  0xda   :  { %v127_v11 = vpop.f32.mrf.mxu0 }
  0xdc   :  { %v397_v12 = vpop.f32.mrf.mxu0 }
  0xde   :  { %v132_v13 = vpop.f32.mrf.mxu0 }
  0xe0   :  { %v400_v14 = vpop.f32.mrf.mxu0 }
  0xe2   :  { %v137_v15 = vpop.f32.mrf.mxu0 }
  0xe4   :  { %v403_v16 = vpop.f32.mrf.mxu0 }
  0xe6   :  { %v142_v17 = vpop.f32.mrf.mxu0 }
  0xe8   :  { %v406_v18 = vpop.f32.mrf.mxu0 }
  0xea   :  { %v147_v19 = vpop.f32.mrf.mxu0 }
  0xeb   :  { %411 = vmatpush3.msra.mxu1 %v147_v19 }
  0xec   :  { %v409_v20 = vpop.f32.mrf.mxu0  ;;  %412 = vmatprep.subr.mxu1 %v482_v1 }
  0xed   :  { %413 = vmatpush3.msra.mxu1 %v142_v17 }
  0xee   :  { %414 = vmatprep.subr.mxu1 %v482_v1 }
  0xef   :  { %415 = vmatpush3.msra.mxu1 %v137_v15 }
  0xf0   :  { %416 = vmatprep.subr.mxu1 %v482_v1 }
  0xf1   :  { %417 = vmatpush3.msra.mxu1 %v132_v13 }
  0xf2   :  { %418 = vmatprep.subr.mxu1 %v482_v1 }
  0xf3   :  { %419 = vmatpush3.msra.mxu1 %v127_v11 }
  0xf4   :  { %421 = vmatmul.mubr.msk.f32.vlgmr.msra.gmra.mxu1 %vm45_vm1, %v354_v21  ;;  %v321_v21 = vstv %s320_s3 }
  0xf5   :  { %423 = vmatprep.mubr.msk.f32.mxu1 %vm483_vm0, %v482_v1 }
  0xf8   :  { %424 = vmatmul.mubr.msk.f32.gmra.mxu1 %vm45_vm1, %v355_v22  ;;  %v324_v22 = vstv %s364_s4 }
  0xf9   :  { %426 = vmatprep.mubr.msk.f32.mxu1 %vm483_vm0, %v482_v1 }
  0xfc   :  { %427 = vmatmul.mubr.msk.f32.gmra.mxu1 %vm45_vm1, %v356_v23 }
  0xfd   :  { %429 = vmatprep.mubr.msk.f32.mxu1 %vm483_vm0, %v482_v1 }
 0x100   :  { %430 = vmatmul.mubr.msk.f32.gmra.mxu1 %vm45_vm1, %v357_v24 }
 0x101   :  { %432 = vmatprep.mubr.msk.f32.mxu1 %vm483_vm0, %v482_v1 }
 0x104   :  { %433 = vmatmul.mubr.msk.f32.gmra.mxu1 %vm45_vm1, %v358_v25 }
 0x1b4   :  { %v238_v26 = vpop.f32.mrf.mxu1 }
 0x1b5   :  { %v267_v34 = vsub.f32 %v238_v26, %v262_v29 }
 0x1b6   :  { %v422_v27 = vpop.f32.mrf.mxu1 }
 0x1b7   :  { %v272_v40 = vmul.f32 %v267_v34, %v267_v34 }
 0x1b8   :  { %v243_v30 = vpop.f32.mrf.mxu1 }
 0x1b9   :  { %v268_v31 = vsub.f32 %v243_v30, %v263_v28  ;;  %v277_v49 = vsel %vm45_vm1, %v272_v40, 0.0 }
 0x1ba   :  { %v425_v32 = vpop.f32.mrf.mxu1 }
 0x1bb   :  { %v273_v36 = vmul.f32 %v268_v31, %v268_v31 }
 0x1bc   :  { %v248_v35 = vpop.f32.mrf.mxu1 }
 0x1bd   :  { %v269_v37 = vsub.f32 %v248_v35, %v264_v33  ;;  %v278_v43 = vsel %vm45_vm1, %v273_v36, 0.0 }
 0x1be   :  { %v428_v38 = vpop.f32.mrf.mxu1  ;;  %v279_v52 = vadd.f32 %v278_v43, %v277_v49 }
 0x1bf   :  { %v274_v41 = vmul.f32 %v269_v37, %v269_v37 }
 0x1c0   :  { %v253_v42 = vpop.f32.mrf.mxu1 }
 0x1c1   :  { %v270_v44 = vsub.f32 %v253_v42, %v265_v39  ;;  %v280_v50 = vsel %vm45_vm1, %v274_v41, 0.0 }
 0x1c2   :  { %v431_v45 = vpop.f32.mrf.mxu1  ;;  %v281_v58 = vadd.f32 %v280_v50, %v279_v52 }
 0x1c3   :  { %v275_v51 = vmul.f32 %v270_v44, %v270_v44 }
 0x1c4   :  { %v258_v53 = vpop.f32.mrf.mxu1 }
 0x1c5   :  { %v271_v54 = vsub.f32 %v258_v53, %v266_v46  ;;  %v282_v55 = vsel %vm45_vm1, %v275_v51, 0.0 }
 0x1c6   :  { %v434_v57 = vpop.f32.mrf.mxu1  ;;  %v283_v60 = vadd.f32 %v282_v55, %v281_v58 }
 0x1c7   :  { %v276_v59 = vmul.f32 %v271_v54, %v271_v54 }
 0x1c9   :  { %v284_v61 = vsel %vm45_vm1, %v276_v59, 0.0 }
 0x1ca   :  { %v285_v63 = vadd.f32 %v284_v61, %v283_v60 }
 0x1cc   :  { %286 = vadd.xlane.f32.xlu0 %v285_v63 }
 0x1d0   :  { %309 = vadd.xlane.f32.xlu0 %v308_v0 }
 0x255   :  { %v287_v1 = vpop.xlane.xlu0 %286 }
 0x256   :  { %v288_v2 = vrot.slane %v287_v1, 4 }
 0x258   :  { %v289_v3 = vadd.f32 %v288_v2, %v287_v1 }
 0x259   :  { %v310_v4 = vpop.xlane.xlu0 %309 }
 0x25a   :  { %v290_v5 = vrot.slane %v289_v3, 2  ;;  %v311_v6 = vrot.slane %v310_v4, 4 }
 0x25c   :  { %v312_v7 = vadd.f32 %v311_v6, %v310_v4  ;;  %v291_v8 = vadd.f32 %v290_v5, %v289_v3 }
 0x25e   :  { %v313_v9 = vrot.slane %v312_v7, 2  ;;  %v292_v10 = vrot.slane %v291_v8, 1 }
 0x260   :  { %v314_v11 = vadd.f32 %v313_v9, %v312_v7  ;;  %v293_v12 = vadd.f32 %v292_v10, %v291_v8 }
 0x262   :  { %435 = vpush %v293_v12  ;;  %v315_v13 = vrot.slane %v314_v11, 1 }
 0x264   :  { %v316_v14 = vadd.f32 %v315_v13, %v314_v11 }
 0x266   :  { %437 = vpush %v316_v14 }
 0x293   :  { %s436_s2 = spop %435 }
 0x294   :  { %v295_v15 = vstv %s436_s2 }
 0x295   :  { %443 = vrsqrt.f32 %v295_v15  ;;  %vm298_vm3 = vcmp.eq.f32.partialorder %v295_v15, inf  ;;  %v301_v20 = vand.u32 2147483648, %v295_v15  ;;  %vm300_vm4 = vcmp.eq.f32.partialorder %v295_v15, 0.0 }
 0x297   :  { %s438_s14 = spop %437 }
 0x298   :  { %v318_v16 = vstv %s438_s14 }
 0x299   :  { %v319_v19 = vmul.f32 0.00390625, %v318_v16 }
 0x29b   :  { %v322_v25 = vmul.f32 %v321_v21, %v319_v19 }
 0x2a2   :  { %v444_v17 = vpop.eup %443 }
 0x2a3   :  { %v297_v18 = vmul.f32 %v444_v17, %v295_v15 }
 0x2a5   :  { %v299_v23 = vsel %vm298_vm3, %v295_v15, %v297_v18 }
 0x2a6   :  { %v302_v24 = vsel %vm300_vm4, %v301_v20, %v299_v23 }
 0x2a7   :  { %v325_v26 = vmul.f32 %v324_v22, %v302_v24 }
 0x2a9   :  { %v326_v27 = vadd.f32 %v325_v26, %v322_v25 }
 0x2ab   :  { %328 = vst.msk [vmem:[#allocation5] sm:$0x1] %vm327_vm5, %v326_v27 }
 0x2ac   :  { %468 = shalt.err (!%p465_p9)
}
 0x2ad   :  { %338 = dma.vmem_to_hbm [thread:$0]  %s336_s16, 16, %s637_s5, [#allocation3]  }
 0x2ae   :  { %479 = dma.done.wait [#allocation3], 16  }
 0x2af   :  { %480 = vsyncadd [#allocation3], 4294967280 }
 0x2b0   :  { %342 = vsyncpa [#allocation3], 1 }
 0x2b1   :  { %343 = vsyncpa [#allocation4], 1 }

</bundles_post_ra>
